<compile_context>
chip_gen: v6e
topology: v6e:2x2x1
jax: 0.10.0
libtpu: 0.0.40
codegen_flags: <defaults>
</compile_context>

<pallas_src>
import math
import numpy as np
import jax
import jax.numpy as jnp
from jax.experimental import pallas as pl
from jax.experimental.pallas import tpu as pltpu


# ----------------------- module-definition helpers (deterministic) -----------------------

def get_freq_indices(method):
    assert method in ['top1', 'top2', 'top4', 'top8', 'top16', 'top32',
                      'bot1', 'bot2', 'bot4', 'bot8', 'bot16', 'bot32',
                      'low1', 'low2', 'low4', 'low8', 'low16', 'low32']
    num_freq = int(method[3:])
    if 'top' in method:
        all_x = [0, 0, 6, 0, 0, 1, 1, 4, 5, 1, 3, 0, 0, 0, 3, 2,
                 4, 6, 3, 5, 5, 2, 6, 5, 5, 3, 3, 4, 2, 2, 6, 1]
        all_y = [0, 1, 0, 5, 2, 0, 2, 0, 0, 6, 0, 4, 6, 3, 5, 2,
                 6, 3, 3, 3, 5, 1, 1, 2, 4, 2, 1, 1, 3, 0, 5, 3]
    elif 'low' in method:
        all_x = [0, 0, 1, 1, 0, 2, 2, 1, 2, 0, 3, 4, 0, 1, 3, 0,
                 1, 2, 3, 4, 5, 0, 1, 2, 3, 4, 5, 6, 1, 2, 3, 4]
        all_y = [0, 1, 0, 1, 2, 0, 1, 2, 2, 3, 0, 0, 4, 3, 1, 5,
                 4, 3, 2, 1, 0, 6, 5, 4, 3, 2, 1, 0, 6, 5, 4, 3]
    else:
        all_x = [6, 1, 3, 3, 2, 4, 1, 2, 4, 4, 5, 1, 4, 6, 2, 5,
                 6, 1, 6, 2, 2, 4, 3, 3, 5, 5, 6, 2, 5, 5, 3, 6]
        all_y = [6, 4, 4, 6, 6, 3, 1, 4, 4, 5, 6, 5, 2, 2, 5, 1,
                 4, 3, 5, 0, 3, 1, 1, 2, 4, 2, 1, 1, 5, 3, 3, 3]
    return all_x[:num_freq], all_y[:num_freq]


def build_dct_filter(height, width, mapper_x, mapper_y, channel):
    """Same construction as MultiSpectralDCTLayer.get_dct_filter."""
    def build_filter(pos, freq, POS):
        result = math.cos(math.pi * freq * (pos + 0.5) / POS) / math.sqrt(POS)
        return result if freq == 0 else result * math.sqrt(2)

    dct_filter = np.zeros((channel, height, width), dtype=np.float32)
    c_part = channel // len(mapper_x)
    for i, (u_x, v_y) in enumerate(zip(mapper_x, mapper_y)):
        for t_x in range(height):
            for t_y in range(width):
                dct_filter[i * c_part:(i + 1) * c_part, t_x, t_y] = (
                    build_filter(t_x, u_x, height) * build_filter(t_y, v_y, width))
    return dct_filter


def build_fused_weight(dct_weight, conv_weight, h, w):
    """Parameter-build-time fusion of pool + DCT + depthwise-conv center tap.

    dct_weight:  (C, dct_h, dct_w)   MultiSpectralDCTLayer buffer
    conv_weight: (C, 3)              Conv1d(k=3, groups=C) weight, i.e. weight[:, 0, :]
    Returns (C, h*w) float32: W_fused[c, hw] = dct[c, h//sh, w//sw]/(sh*sw) * conv[c, 1]
    """
    c, dct_h, dct_w = dct_weight.shape
    # TODO(synk): non-divisible adaptive_avg_pool2d (fractional windows) is not implemented.
    assert h % dct_h == 0 and w % dct_w == 0
    sh, sw = h // dct_h, w // dct_w
    wfull = jnp.repeat(jnp.repeat(dct_weight.astype(jnp.float32), sh, axis=1), sw, axis=2)
    wfull = wfull / float(sh * sw)
    wfull = wfull * conv_weight[:, 1].astype(jnp.float32)[:, None, None]  # only live conv tap
    return wfull.reshape(c, h * w)


# ------------------------------------ tile selection --------------------------------------

def _choose_tiles(n, c, hw_pad, itemsize, budget_bytes):
    """Largest TPU-legal (n_tile, c_tile) (divisors of n / c) whose double-buffered
    working set fits the soft VMEM budget."""
    c_cands = sorted({d for d in range(1, min(c, 1024) + 1)
                      if c % d == 0 and d % 128 == 0} | {c}, reverse=True)
    n_cands = sorted({d for d in range(1, min(n, 64) + 1)
                      if n % d == 0 and d % 8 == 0} | {n}, reverse=True)
    best = None
    for ct in c_cands:
        for nt in n_cands:
            blk_elems = nt * ct * hw_pad + ct * hw_pad + nt * max(ct, 128)
            total = 2 * blk_elems * itemsize           # double-buffered pipeline
            if total <= budget_bytes:
                key = (nt * ct, ct)
                if best is None or key > best[0]:
                    best = (key, nt, ct)
                break                                   # largest fitting nt for this ct
    if best is None:                                    # soft budget: smallest legal tiles
        return n_cands[-1], c_cands[-1]
    return best[1], best[2]


# ----------------------------------- Pallas kernel ----------------------------------------

def fa_channel_attn_kernel(x_ref, w_ref, o_ref):
    # x_ref: (n_tile, c_tile, H*W)  raw-resolution input slab (NCHW, spatial flattened)
    # w_ref: (c_tile, H*W)          fused pool * DCT * conv-center-tap weight
    # o_ref: (n_tile, c_tile)       sigmoid channel attention (channels on lanes)
    x = x_ref[...].astype(jnp.float32)
    w = w_ref[...].astype(jnp.float32)
    y = jnp.sum(x * w[None, :, :], axis=-1)            # fused weighted spatial reduce (f32 acc)
    o_ref[...] = jax.nn.sigmoid(y).astype(o_ref.dtype)


def fa_channel_attention(x, fused_weight, *, vmem_block_budget_bytes=8 * 1024 * 1024):
    """x: (N, C, H, W) NCHW.  fused_weight: (C, H*W) from build_fused_weight.
    Returns (N, C, 1, 1) float32 channel attention."""
    n, c, h, w = x.shape
    hw = h * w
    assert fused_weight.shape == (c, hw)

    x_flat = x.reshape(n, c, hw)                        # free reshape (contiguous collapse)
    fused_weight = fused_weight.astype(x_flat.dtype)

    hw_pad = -(-hw // 128) * 128                        # lane padding inside VMEM
    itemsize = jnp.dtype(x_flat.dtype).itemsize
    n_tile, c_tile = _choose_tiles(n, c, hw_pad, itemsize, vmem_block_budget_bytes)

    # Grid: channel tiles outer, batch inner -> the fused-weight block index is constant
    # across the fast axis, so it is DMA'd once per channel tile and reused over the batch.
    grid = (c // c_tile, n // n_tile)

    out = pl.pallas_call(
        fa_channel_attn_kernel,
        out_shape=jax.ShapeDtypeStruct((n, c), jnp.float32),
        grid_spec=pltpu.PrefetchScalarGridSpec(
            num_scalar_prefetch=0,
            grid=grid,
            in_specs=[
                pl.BlockSpec((n_tile, c_tile, hw), lambda ci, ni: (ni, ci, 0)),
                pl.BlockSpec((c_tile, hw), lambda ci, ni: (ci, 0)),
            ],
            out_specs=pl.BlockSpec((n_tile, c_tile), lambda ci, ni: (ni, ci)),
        ),
        compiler_params=pltpu.CompilerParams(
            dimension_semantics=("parallel", "parallel"),   # both TCs on v7x; no-op on v5e/v6e
            vmem_limit_bytes=32 * 1024 * 1024,              # explicit, fits v7x's 64 MiB physical
        ),
    )(x_flat, fused_weight)

    return out.reshape(n, c, 1, 1)


# --------------------------------------- demo ----------------------------------------------

if __name__ == "__main__":
    # top16 requires channel % 16 == 0 -> smallest valid channel count is 16
    channel, dct_h, dct_w = 16, 7, 7
    n, h, w = 2, 14, 14                       # h,w != dct_h,dct_w exercises the fused pooling

    key = jax.random.PRNGKey(0)
    kx, kw = jax.random.split(key)
    x = jax.random.normal(kx, (n, channel, h, w), dtype=jnp.float32)

    # DCT filter buffer (deterministic from the module definition)
    mapper_x, mapper_y = get_freq_indices('top16')
    mapper_x = [mx * (dct_h // 7) for mx in mapper_x]
    mapper_y = [my * (dct_w // 7) for my in mapper_y]
    dct_weight = jnp.asarray(build_dct_filter(dct_h, dct_w, mapper_x, mapper_y, channel))

    # depthwise Conv1d(channel, channel, k=3, groups=channel, bias=False):
    # weight shape (channel, 1, 3) -> stored as (channel, 3); kaiming-uniform bound 1/sqrt(fan_in)
    bound = 1.0 / math.sqrt(1 * 3)
    conv_weight = jax.random.uniform(kw, (channel, 3), minval=-bound, maxval=bound,
                                     dtype=jnp.float32)

    # one-time parameter fusion (pool scale + DCT filter + conv center tap)
    fused_weight = build_fused_weight(dct_weight, conv_weight, h, w)

    y = fa_channel_attention(x, fused_weight)
    jax.block_until_ready(y)
    assert y.shape == (n, channel, 1, 1)

    # plain-JAX reference of the original module (pool -> DCT sum -> conv center tap -> sigmoid)
    sh, sw = h // dct_h, w // dct_w
    x_pooled = x.reshape(n, channel, dct_h, sh, dct_w, sw).mean(axis=(3, 5))
    v = jnp.sum(x_pooled * dct_weight[None], axis=(2, 3))
    ref = jax.nn.sigmoid(v * conv_weight[:, 1][None])[:, :, None, None]

    assert bool(jnp.all(jnp.isfinite(y)))
    assert bool(jnp.allclose(y, ref, atol=2e-5, rtol=2e-5)), "mismatch vs reference"
    print("KERNEL_OK")
</pallas_src>

<mosaic_0001>
module attributes {stable_mosaic.version = 11 : i64} {
  func.func @fa_channel_attn_kernel(%arg0: i32, %arg1: i32, %arg2: memref<2x16x196xf32, #tpu.memory_space<vmem>>, %arg3: memref<16x196xf32, #tpu.memory_space<vmem>>, %arg4: memref<2x16xf32, #tpu.memory_space<vmem>>) attributes {dimension_semantics = [#tpu.dimension_semantics<parallel>, #tpu.dimension_semantics<parallel>], iteration_bounds = array<i64: 1, 1>, scalar_prefetch = 0 : i64, scratch_operands = 0 : i64, tpu.core_type = #tpu.core_type<tc>, window_params = [{transform_indices = @transform_0, window_bounds = array<i64: 2, 16, 196>}, {transform_indices = @transform_1, window_bounds = array<i64: 16, 196>}, {transform_indices = @transform_2, window_bounds = array<i64: 2, 16>}]} {
    %c0 = arith.constant 0 : index
    %c0_0 = arith.constant 0 : index
    %c0_1 = arith.constant 0 : index
    %0 = vector.load %arg2[%c0, %c0_0, %c0_1] : memref<2x16x196xf32, #tpu.memory_space<vmem>>, vector<2x16x196xf32>
    %c0_2 = arith.constant 0 : index
    %c0_3 = arith.constant 0 : index
    %1 = vector.load %arg3[%c0_2, %c0_3] : memref<16x196xf32, #tpu.memory_space<vmem>>, vector<16x196xf32>
    %2 = vector.shape_cast %1 : vector<16x196xf32> to vector<1x16x196xf32>
    %3 = vector.broadcast %2 : vector<1x16x196xf32> to vector<2x16x196xf32>
    %4 = arith.mulf %0, %3 : vector<2x16x196xf32>
    %cst = arith.constant dense<0.000000e+00> : vector<2x16xf32>
    %5 = vector.multi_reduction <add>, %4, %cst [2] : vector<2x16x196xf32> to vector<2x16xf32>
    %6 = arith.negf %5 : vector<2x16xf32>
    %7 = math.exp %6 : vector<2x16xf32>
    %cst_4 = arith.constant 1.000000e+00 : f32
    %8 = vector.broadcast %cst_4 : f32 to vector<2x16xf32>
    %9 = arith.addf %8, %7 : vector<2x16xf32>
    %10 = arith.divf %8, %9 : vector<2x16xf32>
    %c0_5 = arith.constant 0 : index
    %c0_6 = arith.constant 0 : index
    %11 = vector.load %arg4[%c0_5, %c0_6] : memref<2x16xf32, #tpu.memory_space<vmem>>, vector<2x16xf32>
    tpu.vector_store %arg4[%c0_5, %c0_6], %10 {strides = array<i32>} : memref<2x16xf32, #tpu.memory_space<vmem>>, vector<2x16xf32>,
    return
  }
  func.func @transform_0(%arg0: i32, %arg1: i32) -> (i32, i32, i32) {
    %c0_i32 = arith.constant 0 : i32
    %c0_i32_0 = arith.constant 0 : i32
    return %arg1, %arg0, %c0_i32 : i32, i32, i32
  }
  func.func @transform_1(%arg0: i32, %arg1: i32) -> (i32, i32) {
    %c0_i32 = arith.constant 0 : i32
    %c0_i32_0 = arith.constant 0 : i32
    return %arg0, %c0_i32 : i32, i32
  }
  func.func @transform_2(%arg0: i32, %arg1: i32) -> (i32, i32) {
    %c0_i32 = arith.constant 0 : i32
    return %arg1, %arg0 : i32, i32
  }
}

</mosaic_0001>

<bundles_post_ra>
// kernel: tpu_custom_call.1
= control target key start
LH: loop header
LB: loop body
LE: loop exit
PB: predicated region body
PF: predicated region fallthrough
CT: control target
= control target key end

     0   :  { %7 = vsyncpa [#allocation3], 0  ;;  %s272_s0 = inlined_call_operand.hbm [shape: f32[2,16,196], index: 0, kind: input, shape index: {}]   ;;  %s273_s1 = inlined_call_operand.hbm [shape: f32[16,196], index: 1, kind: input, shape index: {}]   ;;  %s274_s2 = inlined_call_operand.hbm [shape: f32[2,16], index: 2, kind: output, shape index: {}]  }
   0x1   :  { %8 = vsyncpa [#allocation6], 0 }
   0x2   :  { %9 = vsyncpa [#allocation4], 0  ;;  %s239_s9 = smov [#allocation2]  }
   0x3   :  { %s15_s10 = sshll.u32 %s239_s9, 4  ;;  %s16_s10 = int_to_ptr.vmem [resolvable:$true] %s15_s10 }
   0x4   :  { %s181_s11 = scalar_lea.vmem %s16_s10, 1024  ;;  %p186_p1 = scmp.lt.s32.totalorder %s16_s10, %s16_s10 }
   0x5   :  { %p182_p0 = scmp.ne.s32.totalorder %s16_s10, %s181_s11  ;;  %p187_p2 = scmp.lt.s32.totalorder %s181_s11, %s181_s11 }
   0x7   :  { %p188_p3 = por %p187_p2, %p186_p1 }
   0x9   :  { %p189_p4 = pnand %p188_p3, %p182_p0 }
   0xb   :  { %192 = shalt.err (!%p189_p4)
}
   0xc   :  { %s240_s12 = smov 256   ;;  %s241_s13 = smov 16  }
   0xd   :  { %21 = dma.hbm_to_vmem [thread:$0]  %s272_s0, 1024, %s16_s10, [#allocation3], %s240_s12, %s240_s12, %s241_s13  }
   0xe   :  { %s242_s16 = smov [#allocation5]  }
   0xf   :  { %s27_s17 = sshll.u32 %s242_s16, 4  ;;  %s28_s17 = int_to_ptr.vmem [resolvable:$true] %s27_s17 }
  0x10   :  { %s201_s18 = scalar_lea.vmem %s28_s17, 512  ;;  %p206_p6 = scmp.lt.s32.totalorder %s28_s17, %s28_s17 }
  0x11   :  { %p202_p5 = scmp.ne.s32.totalorder %s28_s17, %s201_s18  ;;  %p207_p7 = scmp.lt.s32.totalorder %s201_s18, %s201_s18 }
  0x13   :  { %p208_p8 = por %p207_p7, %p206_p6 }
  0x15   :  { %p209_p9 = pnand %p208_p8, %p202_p5 }
  0x17   :  { %212 = shalt.err (!%p209_p9)
}
  0x18   :  { %33 = dma.hbm_to_vmem [thread:$0]  %s273_s1, 512, %s28_s17, [#allocation6], %s240_s12, %s240_s12, %s241_s13  }
  0x19   :  { %233 = dma.done.wait [#allocation3], 1024  }
  0x1a   :  { %234 = vsyncadd [#allocation3], 4294966272 }
  0x1b   :  { %235 = dma.done.wait [#allocation6], 512  }
  0x1c   :  { %236 = vsyncadd [#allocation6], 4294966784  ;;  %v44_v0 = vld [vmem:[#allocation2 + $0x20] sm:$0xff]  ;;  %v45_v1 = vld [vmem:[#allocation2 + $0x28] sm:$0xff]  ;;  %vm60_vm0 = vcmask 556032   ;;  %v105_v44 = vlaneseq  ;;  %vm116_vm1 = vcmask 130112  }
  0x1d   :  { %v48_v2 = vld [vmem:[#allocation5] sm:$0xff]  ;;  %v49_v3 = vld [vmem:[#allocation5 + $0x8] sm:$0xff]  ;;  %v46_v10 = vld [vmem:[#allocation2 + $0x30] sm:$0xff]  ;;  %s243_s0 = smov [#allocation7]   ;;  %vm127_vm2 = vcmask 1041409   ;;  %vm130_vm3 = vcmask 123904  }
  0x1e   :  { %v56_v4 = vmul.f32 %v48_v2, %v44_v0  ;;  %v40_v5 = vld [vmem:[#allocation2] sm:$0xff]  ;;  %v41_v6 = vld [vmem:[#allocation2 + $0x8] sm:$0xff]  ;;  %v57_v7 = vmul.f32 %v49_v3, %v45_v1  ;;  %v47_v11 = vld [vmem:[#allocation2 + $0x38] sm:$0xff]  ;;  %v106_v45 = vand.u32 127, %v105_v44  ;;  %v108_v46 = vshrl.u32 %v105_v44, 7  ;;  %s138_s1 = sshll.u32 %s243_s0, 4  ;;  %s139_s1 = int_to_ptr.vmem [resolvable:$true] %s138_s1 }
  0x1f   :  { %v52_v8 = vmul.f32 %v48_v2, %v40_v5  ;;  %v53_v9 = vmul.f32 %v49_v3, %v41_v6  ;;  %v50_v12 = vld [vmem:[#allocation5 + $0x10] sm:$0xff]  ;;  %v51_v13 = vld [vmem:[#allocation5 + $0x18] sm:$0xff]  ;;  %s213_s21 = scalar_lea.vmem %s139_s1, 32  ;;  %p218_p11 = scmp.lt.s32.totalorder %s139_s1, %s139_s1 }
  0x20   :  { %v58_v14 = vmul.f32 %v50_v12, %v46_v10  ;;  %v42_v15 = vld [vmem:[#allocation2 + $0x10] sm:$0xff]  ;;  %v43_v16 = vld [vmem:[#allocation2 + $0x18] sm:$0xff]  ;;  %v69_v17 = vsel %vm60_vm0, %v57_v7, 0.0  ;;  %v59_v19 = vmul.f32 %v51_v13, %v47_v11  ;;  %v111_v47 = vadd.s32 4294967288, %v106_v45  ;;  %p214_p10 = scmp.ne.s32.totalorder %s139_s1, %s213_s21  ;;  %p219_p12 = scmp.lt.s32.totalorder %s213_s21, %s213_s21 }
  0x21   :  { %v61_v18 = vsel %vm60_vm0, %v53_v9, 0.0  ;;  %v54_v20 = vmul.f32 %v50_v12, %v42_v15  ;;  %v70_v21 = vadd.f32 %v69_v17, %v56_v4  ;;  %v55_v23 = vmul.f32 %v51_v13, %v43_v16 }
  0x22   :  { %v62_v22 = vadd.f32 %v61_v18, %v52_v8  ;;  %v73_v24 = vsel %vm60_vm0, %v59_v19, 0.0  ;;  %v109_v48 = vsub.s32 %v106_v45, %v108_v46  ;;  %v114_v49 = vsub.s32 %v111_v47, %v108_v46  ;;  %p220_p13 = por %p219_p12, %p218_p11 }
  0x23   :  { %71 = vadd.xlane.f32.xlu1 %v70_v21  ;;  %v74_v25 = vadd.f32 %v73_v24, %v58_v14  ;;  %v65_v26 = vsel %vm60_vm0, %v55_v23, 0.0 }
  0x24   :  { %63 = vadd.xlane.f32.xlu0 %v62_v22  ;;  %v66_v27 = vadd.f32 %v65_v26, %v54_v20  ;;  %p221_p0 = pnand %p220_p13, %p214_p10 }
  0x27   :  { %75 = vadd.xlane.f32.xlu1 %v74_v25 }
  0x28   :  { %67 = vadd.xlane.f32.xlu0 %v66_v27 }
  0xac   :  { %v72_v28 = vpop.xlane.xlu1 %71 }
  0xad   :  { %v64_v29 = vpop.xlane.xlu0 %63  ;;  %v150_v30 = vmul.f32 -1.442695, %v72_v28 }
  0xae   :  { %v148_v31 = vmul.f32 -1.442695, %v64_v29 }
  0xaf   :  { %157 = vpow2.f32 %v150_v30 }
  0xb0   :  { %159 = vpow2.f32 %v148_v31  ;;  %v76_v32 = vpop.xlane.xlu1 %75 }
  0xb1   :  { %v68_v33 = vpop.xlane.xlu0 %67  ;;  %v151_v34 = vmul.f32 -1.442695, %v76_v32 }
  0xb2   :  { %v149_v35 = vmul.f32 -1.442695, %v68_v33 }
  0xb3   :  { %161 = vpow2.f32 %v151_v34 }
  0xb4   :  { %163 = vpow2.f32 %v149_v35 }
  0xbc   :  { %v158_v36 = vpop.eup %157 }
  0xbd   :  { %v160_v37 = vpop.eup %159  ;;  %v91_v38 = vadd.f32 1.0, %v158_v36 }
  0xbe   :  { %v89_v39 = vadd.f32 1.0, %v160_v37 }
  0xbf   :  { %165 = vrcp.f32 %v91_v38 }
  0xc0   :  { %v162_v40 = vpop.eup %161  ;;  %167 = vrcp.f32 %v89_v39 }
  0xc1   :  { %v164_v41 = vpop.eup %163  ;;  %v92_v42 = vadd.f32 1.0, %v162_v40 }
  0xc2   :  { %v90_v43 = vadd.f32 1.0, %v164_v41 }
  0xc3   :  { %169 = vrcp.f32 %v92_v42 }
  0xc4   :  { %171 = vrcp.f32 %v90_v43 }
  0xcc   :  { %v166_v50 = vpop.eup %165 }
  0xcd   :  { %v168_v51 = vpop.eup %167  ;;  %v121_v54 = vrot.slane %v166_v50, %v109_v48 }
  0xce   :  { %v110_v56 = vrot.slane %v168_v51, %v109_v48 }
  0xd0   :  { %v170_v52 = vpop.eup %169 }
  0xd1   :  { %v172_v53 = vpop.eup %171  ;;  %v125_v55 = vrot.slane %v170_v52, %v114_v49 }
  0xd2   :  { %v115_v57 = vrot.slane %v172_v53, %v114_v49 }
  0xd3   :  { %v126_v58 = vsel %vm116_vm1, %v125_v55, %v121_v54 }
  0xd4   :  { %v117_v59 = vsel %vm116_vm1, %v115_v57, %v110_v56 }
  0xd5   :  { %v128_v60 = vsel %vm127_vm2, %v126_v58, %v117_v59 }
  0xd6   :  { %131 = vst.msk [vmem:[#allocation7] sm:$0x3] %vm130_vm3, %v128_v60 }
  0xd7   :  { %224 = shalt.err (!%p221_p0)
}
  0xd8   :  { %141 = dma.vmem_to_hbm [thread:$0]  %s139_s1, 32, %s274_s2, [#allocation4]  }
  0xd9   :  { %237 = dma.done.wait [#allocation4], 32  }
  0xda   :  { %238 = vsyncadd [#allocation4], 4294967264 }
  0xdb   :  { %145 = vsyncpa [#allocation3], 1 }
  0xdc   :  { %146 = vsyncpa [#allocation6], 1 }
  0xdd   :  { %147 = vsyncpa [#allocation4], 1 }

</bundles_post_ra>
